<compile_context>
chip_gen: v6e
topology: v6e:2x2x1
jax: 0.10.0
libtpu: 0.0.40
codegen_flags: <defaults>
</compile_context>

<pallas_src>
import functools
import math

import jax
import jax.numpy as jnp
from jax.experimental import pallas as pl
from jax.experimental.pallas import tpu as pltpu

_LANE = 128
_MiB = 1024 * 1024
# Largest single input block we will ever request (review: 8-16 MiB blocks).
_MAX_BLOCK_BYTES = 16 * _MiB


def _round_down(x, m):
    return (x // m) * m


def _round_up(x, m):
    return ((x + m - 1) // m) * m


def _vmem_limit_bytes():
    """Generation-aware scoped-VMEM budget.

    v7x has 64 MiB physical VMEM per TensorCore, v5e/v6e have 128 MiB; keep
    ~30% headroom for Mosaic internals and never exceed 96 MiB.
    """
    phys = None
    try:
        info = pltpu.get_tpu_info()
        phys = getattr(info, "vmem_capacity_bytes", None)
    except Exception:
        phys = None
    if not phys or phys <= 0:
        phys = 64 * _MiB  # conservative default, valid on every generation
    return int(min(phys * 0.7, 96 * _MiB))


def _block_time_sum(x, t_block):
    """Sum an (t_block, cols) block over axis 0, accumulating in f32."""
    if x.dtype == jnp.float32:
        # Exact f32 VPU/XLU sublane reduce (bit-stable vs. the reference).
        return jnp.sum(x, axis=0, keepdims=True)
    # Narrow dtypes: use the otherwise-idle MXU with f32 accumulation so we
    # never materialize a widened full-block f32 temporary in VMEM/vregs.
    ones = jnp.full((8, t_block), 1.0, dtype=x.dtype)
    s = jax.lax.dot_general(
        ones, x, (((1,), (0,)), ((), ())), preferred_element_type=jnp.float32
    )
    return s[0:1, :]


def _mean_kernel(x_ref, o_ref):
    # x_ref: (T, tile_cols) block; o_ref: (1, tile_cols) block.
    t = x_ref.shape[0]
    s = _block_time_sum(x_ref[...], t)
    o_ref[...] = (s * (1.0 / t)).astype(o_ref.dtype)


def _mean_kernel_tchunked(x_ref, o_ref, acc_ref, *, t_total):
    # Grid = (col_tiles, t_chunks); t_chunks is the innermost "arbitrary" axis.
    k = pl.program_id(1)

    @pl.when(k == 0)
    def _():
        acc_ref[...] = jnp.zeros_like(acc_ref)

    acc_ref[...] += _block_time_sum(x_ref[...], x_ref.shape[0])

    @pl.when(k == pl.num_programs(1) - 1)
    def _():
        o_ref[...] = (acc_ref[...] * (1.0 / t_total)).astype(o_ref.dtype)


@functools.partial(jax.jit, static_argnums=(1,))
def _temporal_mean(x, block_bytes_override=None):
    """Mean over axis 0 of a (T, ...) tensor via a single-pass Pallas kernel."""
    t = x.shape[0]
    inner_shape = x.shape[1:]
    n = math.prod(inner_shape)
    itemsize = jnp.dtype(x.dtype).itemsize

    vmem_limit = _vmem_limit_bytes()
    # Double-buffered input + output blocks must fit comfortably in the limit.
    in_budget = min(_MAX_BLOCK_BYTES, vmem_limit // 4)
    if block_bytes_override is not None:
        in_budget = int(block_bytes_override)

    x2 = x.reshape(t, n)                      # free: metadata-only reshape
    n128 = _round_down(n, _LANE)

    min_cols = n if n < _LANE else _LANE
    needs_t_chunk = t * min_cols * itemsize > in_budget

    cost = pl.CostEstimate(
        flops=t * n, transcendentals=0, bytes_accessed=(t + 1) * n * itemsize
    )

    if not needs_t_chunk:
        # Single pass: the whole T axis lives in one block; grid over columns.
        if n < _LANE:
            cols = n                          # full last dim (allowed < 128)
        else:
            cols = max(_LANE, _round_down(in_budget // (t * itemsize), _LANE))
            # Keep >=4 grid steps when the data permits: >=2 per TensorCore on
            # v7x, and enough steps for DMA pipelining on single-core chips.
            quarter = max(_LANE, _round_down(n128 // 4, _LANE))
            cols = min(cols, quarter, n128)
        num_tiles = pl.cdiv(n, cols)

        out = pl.pallas_call(
            _mean_kernel,
            out_shape=jax.ShapeDtypeStruct((1, n), x.dtype),
            grid_spec=pltpu.PrefetchScalarGridSpec(
                num_scalar_prefetch=0,
                grid=(num_tiles,),
                in_specs=[pl.BlockSpec((t, cols), lambda i: (0, i))],
                out_specs=pl.BlockSpec((1, cols), lambda i: (0, i)),
            ),
            compiler_params=pltpu.CompilerParams(
                dimension_semantics=("parallel",),
                vmem_limit_bytes=vmem_limit,
            ),
            cost_estimate=cost,
        )(x2)
    else:
        # Large-T fallback: second ("arbitrary") grid axis over T-chunks with a
        # resident f32 VMEM accumulator, init/finalize via pl.when.
        cols = n if n < _LANE else min(n128, 4096)
        t_chunk = max(32, _round_down(in_budget // (cols * itemsize), 32))
        t_chunk = min(t_chunk, _round_up(t, 32))
        t_pad = _round_up(t, t_chunk)
        if t_pad != t:
            # Rare path only: zero rows do not change the sum; we divide by the
            # true T inside the kernel.
            x2 = jnp.pad(x2, ((0, t_pad - t), (0, 0)))
        num_chunks = t_pad // t_chunk
        num_tiles = pl.cdiv(n, cols)

        out = pl.pallas_call(
            functools.partial(_mean_kernel_tchunked, t_total=t),
            out_shape=jax.ShapeDtypeStruct((1, n), x.dtype),
            grid_spec=pltpu.PrefetchScalarGridSpec(
                num_scalar_prefetch=0,
                grid=(num_tiles, num_chunks),
                in_specs=[pl.BlockSpec((t_chunk, cols), lambda i, k: (k, i))],
                out_specs=pl.BlockSpec((1, cols), lambda i, k: (0, i)),
                scratch_shapes=[pltpu.VMEM((1, cols), jnp.float32)],
            ),
            compiler_params=pltpu.CompilerParams(
                dimension_semantics=("parallel", "arbitrary"),
                vmem_limit_bytes=vmem_limit,
            ),
            cost_estimate=cost,
        )(x2)

    return out.reshape(inner_shape)


def spike_module_forward(x, spiking=False):
    """Pallas implementation of SpikeModule.forward (module default: _spiking=False)."""
    if spiking or x.ndim != 5:
        # Identity path: SpikeModule only averages 5-D inputs in non-spiking mode.
        return x
    return _temporal_mean(x, None)


def _reference_spike_module(x, spiking=False):
    """Pure-JAX reference mirroring the PyTorch forward."""
    if (not spiking) and x.ndim == 5:
        return jnp.mean(x, axis=0)
    return x


if __name__ == "__main__":
    key = jax.random.PRNGKey(0)
    T, B, C, H, W = 8, 2, 4, 16, 16
    x = jax.random.normal(key, (T, B, C, H, W), dtype=jnp.float32)

    # Non-spiking mode (the module default): temporal mean over T.
    out = jax.block_until_ready(spike_module_forward(x))
    ref = _reference_spike_module(x)
    assert out.shape == ref.shape == (B, C, H, W)
    assert jnp.allclose(out, ref, atol=1e-5, rtol=1e-5), "f32 mismatch vs reference"

    # bf16 input: exercises the MXU reduction path (no full-block f32 widening).
    xb = x.astype(jnp.bfloat16)
    out_b = jax.block_until_ready(spike_module_forward(xb))
    ref_b = jnp.mean(xb.astype(jnp.float32), axis=0)
    assert out_b.dtype == jnp.bfloat16
    assert jnp.allclose(out_b.astype(jnp.float32), ref_b, atol=2e-2, rtol=2e-2), \
        "bf16 mismatch vs reference"

    # Large-T fallback (forced via a tiny block budget): T-chunked accumulator
    # with a ragged, zero-padded last chunk.
    x_long = jax.random.normal(jax.random.PRNGKey(1), (40, B, C, H, W), jnp.float32)
    out_l = jax.block_until_ready(_temporal_mean(x_long, 16 * 1024))
    ref_l = jnp.mean(x_long, axis=0)
    assert jnp.allclose(out_l, ref_l, atol=1e-5, rtol=1e-5), "chunked-T mismatch"

    # Identity paths: spiking mode and non-5-D inputs pass through unchanged.
    assert spike_module_forward(x, spiking=True).shape == x.shape
    assert spike_module_forward(x[0]).shape == (B, C, H, W)

    print("KERNEL_OK")
</pallas_src>

<mosaic_0001>
module attributes {stable_mosaic.version = 11 : i64} {
  func.func @_mean_kernel(%arg0: i32, %arg1: memref<8x512xf32, #tpu.memory_space<vmem>>, %arg2: memref<1x512xf32, #tpu.memory_space<vmem>>) attributes {dimension_semantics = [#tpu.dimension_semantics<parallel>], iteration_bounds = array<i64: 4>, scalar_prefetch = 0 : i64, scratch_operands = 0 : i64, tpu.core_type = #tpu.core_type<tc>, window_params = [{transform_indices = @transform_0, window_bounds = array<i64: 8, 512>}, {transform_indices = @transform_1, window_bounds = array<i64: 1, 512>}]} {
    %c0 = arith.constant 0 : index
    %c0_0 = arith.constant 0 : index
    %0 = vector.load %arg1[%c0, %c0_0] : memref<8x512xf32, #tpu.memory_space<vmem>>, vector<8x512xf32>
    %cst = arith.constant dense<0.000000e+00> : vector<512xf32>
    %1 = vector.multi_reduction <add>, %0, %cst [0] : vector<8x512xf32> to vector<512xf32>
    %2 = vector.shape_cast %1 : vector<512xf32> to vector<1x512xf32>
    %cst_1 = arith.constant 1.250000e-01 : f32
    %3 = vector.broadcast %cst_1 : f32 to vector<1x512xf32>
    %4 = arith.mulf %2, %3 : vector<1x512xf32>
    %c0_2 = arith.constant 0 : index
    %c0_3 = arith.constant 0 : index
    %5 = vector.load %arg2[%c0_2, %c0_3] : memref<1x512xf32, #tpu.memory_space<vmem>>, vector<1x512xf32>
    tpu.vector_store %arg2[%c0_2, %c0_3], %4 {strides = array<i32>} : memref<1x512xf32, #tpu.memory_space<vmem>>, vector<1x512xf32>,
    return
  }
  func.func @transform_0(%arg0: i32) -> (i32, i32) {
    %c0_i32 = arith.constant 0 : i32
    %c0_i32_0 = arith.constant 0 : i32
    return %c0_i32, %arg0 : i32, i32
  }
  func.func @transform_1(%arg0: i32) -> (i32, i32) {
    %c0_i32 = arith.constant 0 : i32
    %c0_i32_0 = arith.constant 0 : i32
    return %c0_i32, %arg0 : i32, i32
  }
}

</mosaic_0001>

<bundles_post_ra>
// kernel: _temporal_mean.1
= control target key start
LH: loop header
LB: loop body
LE: loop exit
PB: predicated region body
PF: predicated region fallthrough
CT: control target
= control target key end

     0   :  { %s272_s6 = smov 0   ;;  %s293_s0 = inlined_call_operand.vmem [shape: f32[8,2048], index: 0, kind: input, shape index: {}]   ;;  %s294_s1 = inlined_call_operand.vmem [shape: f32[1,2048], index: 1, kind: output, shape index: {}]  }
   0x1 LB: > { %s234_s7 = sadd.s32 4294967295, %s259_s6   ;;  %p238_p0 = scmp.ge.s32.totalorder %s259_s6, 1  ;;  %s259_s6 = sphi %s272_s6, %s11_s6  }
   0x2   : > { %p88_p1 = scmp.lt.s32.totalorder %s259_s6, 5 }
   0x4   : > { %p89_p2 = pnand %p238_p0, %p88_p1 }
   0x5   : > { %s239_s8 = sshll.u32 (!%p89_p2), %s234_s7, 2 }
   0x6   : > { %92 = sbr.rel (%p89_p2) target bundleno = 39 (0x27), region = 24  ;;  %p108_p3 = scmp.lt.s32.totalorder (!%p89_p2), %s239_s8, 15 }
   0xb   : > { %s296_s8 = smov (!%p108_p3, %s239_s8), 15  ;;  %v159_v12 = vlaneseq  ;;  %v261_v16 = vmov 1966171168  }
   0xc   : > { %s240_s9 = sshll.u32 %s296_s8, 3  ;;  %v157_v17 = vunpack.c.l.s4 %v261_v16  ;;  %s116_s15 = scalar_lea.vmem %s294_s1, %s296_s8 }
   0xd   : > { %s111_s12 = scalar_lea.vmem %s293_s0, %s240_s9  ;;  %v160_v23 = vshrl.u32 %v159_v12, 7  ;;  %vm181_vm0 = vcmp.lt.s32.totalorder %v159_v12, 512 }
   0xe   : > { %v118_v0 = vld [vmem:[%s111_s12] sm:$0xff]  ;;  %v119_v1 = vld [vmem:[%s111_s12 + $0x8] sm:$0xff]  ;;  %v120_v2 = vld [vmem:[%s111_s12 + $0x10] sm:$0xff]  ;;  %v158_v27 = vunpack.c.0.s8 %v157_v17 }
   0xf   : > { %v121_v3 = vld [vmem:[%s111_s12 + $0x18] sm:$0xff]  ;;  %v122_v4 = vrot.slane %v118_v0, 4  ;;  %v128_v5 = vrot.slane %v119_v1, 4  ;;  %v134_v6 = vrot.slane %v120_v2, 4 }
  0x10   : > { %v140_v7 = vrot.slane %v121_v3, 4  ;;  %v161_v36 = vsub.s32 %v158_v27, %v160_v23 }
  0x11   : > { %v123_v8 = vadd.f32 %v122_v4, %v118_v0  ;;  %v129_v9 = vadd.f32 %v128_v5, %v119_v1  ;;  %v135_v10 = vadd.f32 %v134_v6, %v120_v2 }
  0x12   : > { %v141_v11 = vadd.f32 %v140_v7, %v121_v3 }
  0x13   : > { %v124_v13 = vrot.slane %v123_v8, 2  ;;  %v130_v14 = vrot.slane %v129_v9, 2  ;;  %v136_v15 = vrot.slane %v135_v10, 2 }
  0x14   : > { %v142_v18 = vrot.slane %v141_v11, 2 }
  0x15   : > { %v125_v19 = vadd.f32 %v124_v13, %v123_v8  ;;  %v131_v20 = vadd.f32 %v130_v14, %v129_v9  ;;  %v137_v21 = vadd.f32 %v136_v15, %v135_v10 }
  0x16   : > { %v143_v22 = vadd.f32 %v142_v18, %v141_v11 }
  0x17   : > { %v126_v24 = vrot.slane %v125_v19, 1  ;;  %v132_v25 = vrot.slane %v131_v20, 1  ;;  %v138_v26 = vrot.slane %v137_v21, 1 }
  0x18   : > { %v144_v28 = vrot.slane %v143_v22, 1 }
  0x19   : > { %v127_v29 = vadd.f32 %v126_v24, %v125_v19  ;;  %v133_v30 = vadd.f32 %v132_v25, %v131_v20  ;;  %v139_v31 = vadd.f32 %v138_v26, %v137_v21 }
  0x1a   : > { %v145_v32 = vadd.f32 %v144_v28, %v143_v22 }
  0x1b   : > { %v146_v33 = vmul.f32 0.125, %v127_v29  ;;  %v147_v34 = vmul.f32 0.125, %v133_v30  ;;  %v148_v35 = vmul.f32 0.125, %v139_v31 }
  0x1c   : > { %v149_v37 = vmul.f32 0.125, %v145_v32 }
  0x1d   : > { %v154_v38 = vcombine.low %v146_v33, %v147_v34 }
  0x1e   : > { %v155_v39 = vcombine.low %v148_v35, %v149_v37 }
  0x1f   : > { %v162_v40 = vrot.slane %v154_v38, %v161_v36 }
  0x20   : > { %v169_v41 = vrot.slane %v155_v39, %v161_v36 }
  0x22   : > { %v170_v42 = vcombine.low %v162_v40, %v169_v41 }
  0x24   : > { %v177_v43 = vrot.slane %v170_v42, %v161_v36 }
  0x26   : > { %183 = vst.msk [vmem:[%s116_s15] sm:$0xf] %vm181_vm0, %v177_v43 }
  0x27 PF: > { %s11_s6 = sadd.s32 1, %s259_s6  }
  0x28   : > { %p8_p4 = scmp.ge.s32.totalorder %s11_s6, 6  }
  0x2a   :  { %10 = sbr.rel (!%p8_p4) target bundleno = 1 (0x1), region = 54 }

</bundles_post_ra>
